<compile_context>
chip_gen: v5e
topology: v5e:2x2
jax: 0.10.0
libtpu: 0.0.40
codegen_flags: <defaults>
</compile_context>

<pallas_src>
import functools

import jax
import jax.numpy as jnp
from jax.experimental import pallas as pl
from jax.experimental.pallas import tpu as pltpu

# ---- hyperparameters (args) -------------------------------------------------
NUM_PRODUCTS = 10          # forced by forward(): time_filter.reshape((1, 10))
NUM_CUS_TYPES = 4          # self.cus_type = np.eye(4)
T = 8                      # purchase-history length (args.T)
HIDDEN_W = (32, 32)        # args.w, args.h = 2
NN_OUT = 32                # args.nn_out
SHARE_WIDTH = NUM_PRODUCTS + NUM_CUS_TYPES + 1        # 15
X_DIM = 2 * NUM_PRODUCTS + NUM_CUS_TYPES + 1          # 25

# ---- packed 128-lane input layout (one row per sample) ------------------------
IN_X = 0                   # lanes 0..24  : state x
IN_ONE = X_DIM             # lane 25      : constant 1.0 (bias source)
IN_HIST = 32               # lanes 32..111: history flattened row-major (t*P + p)
IN_WIDTH = 128
CARRY = NN_OUT             # lane 32 of every hidden activation carries 1.0
VALUE_LANE = NN_OUT        # lane 32 of the output holds the critic value

# ---- packed parameter slab: 8 blocks of (128, 128) f32 = 512 KiB --------------
R_WTF = 0            # time-filter "block diagonal" weights (history lanes -> tf)
R_WPEX = 128         # product-encoder, x part (+ bpe folded + carrier source)
R_WPETF = 256        # product-encoder, time-filter part
R_W0PE = 384         # share[0], pe part (+ b0 folded + carrier)
R_W0X = 512          # share[0], (c_e, arrivals) part
R_W1 = 640           # share[1] (+ b1 + carrier)
R_W2 = 768           # share[2] (+ b2 + carrier)
R_WOUT = 896         # [I_32 | wc] + bc  (critic fused with feat pass-through)
SLAB_ROWS = 1024


# ---- Pallas kernel: whole forward pass for one batch block --------------------
def _a2c_kernel(in_ref, slab_ref, out_ref):
    f32 = jnp.float32
    xin = in_ref[...]                                                 # (Mb, 128)

    # time filter: structured matmul over the history lanes + leaky_relu(0.2).
    # Result nonzero only in lanes 0..9.
    ts = jnp.dot(xin, slab_ref[R_WTF:R_WTF + 128, :], preferred_element_type=f32)
    tf = jnp.where(ts >= 0.0, ts, 0.2 * ts)

    # product encoder: relu(x-part + tf-part).  bpe is folded via input lane 25;
    # lane CARRY of the result is 1.0 and carries the bias source forward.
    pe = jnp.maximum(
        jnp.dot(xin, slab_ref[R_WPEX:R_WPEX + 128, :], preferred_element_type=f32)
        + jnp.dot(tf, slab_ref[R_WPETF:R_WPETF + 128, :], preferred_element_type=f32),
        0.0)                                                          # (Mb, 128)

    # share[0]: relu(pe-part + (c_e, arrivals)-part); b0 folded via carrier lane.
    h = jnp.maximum(
        jnp.dot(pe, slab_ref[R_W0PE:R_W0PE + 128, :], preferred_element_type=f32)
        + jnp.dot(xin, slab_ref[R_W0X:R_W0X + 128, :], preferred_element_type=f32),
        0.0)                                                          # (Mb, 128)

    # share[1], share[2]: biases folded, carrier lane propagated.
    h = jnp.maximum(jnp.dot(h, slab_ref[R_W1:R_W1 + 128, :],
                            preferred_element_type=f32), 0.0)
    h = jnp.maximum(jnp.dot(h, slab_ref[R_W2:R_W2 + 128, :],
                            preferred_element_type=f32), 0.0)

    # critic fused with output packing: lanes 0..31 = feat, lane 32 = value.
    out_ref[...] = jnp.dot(h, slab_ref[R_WOUT:R_WOUT + 128, :],
                           preferred_element_type=f32)               # (Mb, 128)


# ---- one-time parameter packing (all layout plumbing hoisted out of the call) --
def pack_params(params):
    f32 = jnp.float32
    P = NUM_PRODUCTS
    W0, W1 = HIDDEN_W

    def blk():
        return jnp.zeros((128, 128), f32)

    # time filter as structured matmul: row (IN_HIST + t*P + p), col p = tfp[p, t]
    tfp = params["time_filter"].astype(f32)                            # (P, T)
    rows = (IN_HIST + jnp.arange(T)[:, None] * P + jnp.arange(P)[None, :]).reshape(-1)
    cols = jnp.tile(jnp.arange(P), T)
    wtf = blk().at[rows, cols].set(tfp.T.reshape(-1))

    wpe = params["wpe"].astype(f32)                                    # (3P, P)
    wpex = blk().at[0:2 * P, 0:P].set(wpe[0:2 * P])
    wpex = wpex.at[IN_ONE, 0:P].set(params["bpe"].astype(f32)[0])      # bpe folded
    wpex = wpex.at[IN_ONE, CARRY].set(1.0)                             # carrier source
    wpetf = blk().at[0:P, 0:P].set(wpe[2 * P:3 * P])

    w0 = params["w0"].astype(f32)                                      # (15, 32)
    w0pe = blk().at[0:P, 0:W0].set(w0[0:P])
    w0pe = w0pe.at[CARRY, 0:W0].set(params["b0"].astype(f32)[0])       # b0 folded
    w0pe = w0pe.at[CARRY, CARRY].set(1.0)                              # carry 1.0 on
    w0x = blk().at[2 * P:2 * P + NUM_CUS_TYPES + 1, 0:W0].set(w0[P:SHARE_WIDTH])

    w1 = blk().at[0:W0, 0:W1].set(params["w1"].astype(f32))
    w1 = w1.at[CARRY, 0:W1].set(params["b1"].astype(f32)[0])
    w1 = w1.at[CARRY, CARRY].set(1.0)

    w2 = blk().at[0:W1, 0:NN_OUT].set(params["w2"].astype(f32))
    w2 = w2.at[CARRY, 0:NN_OUT].set(params["b2"].astype(f32)[0])
    w2 = w2.at[CARRY, CARRY].set(1.0)

    # critic fused with feat pass-through: [I_32 | wc], bias at (carrier row, value lane)
    wout = blk().at[0:NN_OUT, 0:NN_OUT].set(jnp.eye(NN_OUT, dtype=f32))
    wout = wout.at[0:NN_OUT, VALUE_LANE].set(params["wc"].astype(f32)[:, 0])
    wout = wout.at[CARRY, VALUE_LANE].set(params["bc"].astype(f32)[0, 0])

    return jnp.concatenate([wtf, wpex, wpetf, w0pe, w0x, w1, w2, wout], axis=0)


# ---- wrapper -------------------------------------------------------------------
def _pack_inputs(history, x, block_m):
    f32 = jnp.float32
    B = x.shape[0]
    Bp = ((B + block_m - 1) // block_m) * block_m
    hist = history[..., :NUM_PRODUCTS].astype(f32).reshape(B, T * NUM_PRODUCTS)
    packed = jnp.zeros((Bp, IN_WIDTH), f32)
    packed = packed.at[:B, IN_X:IN_X + X_DIM].set(x.astype(f32))
    packed = packed.at[:B, IN_ONE].set(1.0)
    packed = packed.at[:B, IN_HIST:IN_HIST + T * NUM_PRODUCTS].set(hist)
    return packed, B, Bp


@functools.partial(jax.jit, static_argnames=("block_m",))
def a2c_forward(slab, history, x, *, block_m=8):
    """Batched forward. history: (B, T, >=P); x: (B, 25). Use block_m=128 for big B."""
    packed, B, Bp = _pack_inputs(history, x, block_m)
    out = pl.pallas_call(
        _a2c_kernel,
        out_shape=jax.ShapeDtypeStruct((Bp, 128), jnp.float32),
        grid=(Bp // block_m,),
        in_specs=[
            pl.BlockSpec((block_m, IN_WIDTH), lambda i: (i, 0)),   # per-sample inputs
            pl.BlockSpec((SLAB_ROWS, 128), lambda i: (0, 0)),      # weights: resident
        ],
        out_specs=pl.BlockSpec((block_m, 128), lambda i: (i, 0)),  # lane-dense writeback
        compiler_params=pltpu.CompilerParams(
            dimension_semantics=("parallel",)),
    )(packed, slab)
    feat = out[:B, 0:NN_OUT]
    value = out[:B, VALUE_LANE:VALUE_LANE + 1]
    return feat, value


def a2c_forward_single(slab, history, x):
    """Exact module signature: history (T, >=10), x (1, 25) -> ((1, nn_out), (1, 1))."""
    return a2c_forward(slab, history[None], x)


# ---- deterministic parameter init (mirrors the PyTorch __init__) ---------------
def init_params(key):
    ks = jax.random.split(key, 12)
    f32 = jnp.float32
    p = {}
    # time_filter ~ U(0.18, 0.22), shape (num_products, T)
    p["time_filter"] = jax.random.uniform(ks[0], (NUM_PRODUCTS, T),
                                          minval=0.18, maxval=0.22, dtype=f32)
    # product_encoder Linear(3P -> P): default torch init U(-1/sqrt(fan_in), +)
    b = 1.0 / (3 * NUM_PRODUCTS) ** 0.5
    p["wpe"] = jax.random.uniform(ks[1], (3 * NUM_PRODUCTS, NUM_PRODUCTS),
                                  minval=-b, maxval=b, dtype=f32)
    p["bpe"] = jax.random.uniform(ks[2], (1, NUM_PRODUCTS), minval=-b, maxval=b, dtype=f32)
    # share: weights ~ U(-0.1, 0.1), bias = 0.1 (init_weights)
    dims = [SHARE_WIDTH, HIDDEN_W[0], HIDDEN_W[1], NN_OUT]
    for i, name in enumerate(["0", "1", "2"]):
        p["w" + name] = jax.random.uniform(ks[3 + i], (dims[i], dims[i + 1]),
                                           minval=-0.1, maxval=0.1, dtype=f32)
        p["b" + name] = jnp.full((1, dims[i + 1]), 0.1, dtype=f32)
    # critic Linear(nn_out -> 1): weight & bias = 100 / nn_out (init_weights_c)
    init_c = 100.0 / NN_OUT
    p["wc"] = jnp.full((NN_OUT, 1), init_c, dtype=f32)
    p["bc"] = jnp.full((1, 1), init_c, dtype=f32)
    return p


# ---- pure-JAX reference (mirrors the PyTorch forward) ---------------------------
def a2c_forward_ref(params, history, x):
    hist = history[..., :NUM_PRODUCTS].astype(jnp.float32)          # (B, T, P)
    tf = jnp.sum(hist * params["time_filter"].T[None, :, :], axis=1)
    tf = jnp.where(tf >= 0.0, tf, 0.2 * tf)                          # leaky_relu(0.2)
    pe_in = jnp.concatenate([x[:, :2 * NUM_PRODUCTS], tf], axis=1)
    pe = jnp.maximum(pe_in @ params["wpe"] + params["bpe"], 0.0)
    pcn = jnp.concatenate([pe, x[:, 2 * NUM_PRODUCTS:]], axis=1)
    h = jnp.maximum(pcn @ params["w0"] + params["b0"], 0.0)
    h = jnp.maximum(h @ params["w1"] + params["b1"], 0.0)
    feat = jnp.maximum(h @ params["w2"] + params["b2"], 0.0)
    value = feat @ params["wc"] + params["bc"]
    return feat, value


if __name__ == "__main__":
    key = jax.random.PRNGKey(0)
    k_param, k_hist, k_x = jax.random.split(key, 3)

    params = init_params(k_param)
    slab = jax.block_until_ready(pack_params(params))     # one-time packing

    B = 16                                                  # small demo batch
    history = jax.random.uniform(k_hist, (B, T, NUM_PRODUCTS),
                                 minval=0.0, maxval=3.0, dtype=jnp.float32)
    x = jax.random.uniform(k_x, (B, X_DIM), dtype=jnp.float32)

    feat, value = a2c_forward(slab, history, x, block_m=8)
    jax.block_until_ready((feat, value))

    feat_ref, value_ref = a2c_forward_ref(params, history, x)
    assert feat.shape == (B, NN_OUT) and value.shape == (B, 1)
    assert jnp.allclose(feat, feat_ref, atol=1e-4, rtol=1e-4)
    assert jnp.allclose(value, value_ref, atol=1e-3, rtol=1e-4)

    # exact module (batch-1) signature; also exercises the batch-padding path
    f1, v1 = a2c_forward_single(slab, history[0], x[0:1])
    jax.block_until_ready((f1, v1))
    assert f1.shape == (1, NN_OUT) and v1.shape == (1, 1)
    assert jnp.allclose(f1, feat_ref[0:1], atol=1e-4, rtol=1e-4)
    assert jnp.allclose(v1, value_ref[0:1], atol=1e-3, rtol=1e-4)

    print("KERNEL_OK")
</pallas_src>

<mosaic_0001>
module attributes {stable_mosaic.version = 11 : i64} {
  func.func @_a2c_kernel(%arg0: i32, %arg1: memref<8x128xf32, #tpu.memory_space<vmem>>, %arg2: memref<1024x128xf32, #tpu.memory_space<vmem>>, %arg3: memref<8x128xf32, #tpu.memory_space<vmem>>) attributes {dimension_semantics = [#tpu.dimension_semantics<parallel>], iteration_bounds = array<i64: 2>, scalar_prefetch = 0 : i64, scratch_operands = 0 : i64, tpu.core_type = #tpu.core_type<tc>, window_params = [{transform_indices = @transform_0, window_bounds = array<i64: 8, 128>}, {pipeline_mode = #tpu.pipeline_mode<synchronous>, transform_indices = @transform_1, window_bounds = array<i64: 1024, 128>}, {transform_indices = @transform_2, window_bounds = array<i64: 8, 128>}]} {
    %c0 = arith.constant 0 : index
    %c0_0 = arith.constant 0 : index
    %0 = vector.load %arg1[%c0, %c0_0] : memref<8x128xf32, #tpu.memory_space<vmem>>, vector<8x128xf32>
    %c0_1 = arith.constant 0 : index
    %c0_2 = arith.constant 0 : index
    %1 = vector.load %arg2[%c0_1, %c0_2] : memref<1024x128xf32, #tpu.memory_space<vmem>>, vector<128x128xf32>
    %cst = arith.constant dense<0.000000e+00> : vector<8x128xf32>
    %2 = tpu.matmul %0, %1, %cst {dimension_numbers = #tpu.dot_dimension_numbers<[1], [0], [0], [1], [0, 0, 1, 1], [], []>} : vector<8x128xf32>, vector<128x128xf32>, vector<8x128xf32> -> vector<8x128xf32>
    %cst_3 = arith.constant 0.000000e+00 : f32
    %3 = vector.broadcast %cst_3 : f32 to vector<8x128xf32>
    %4 = arith.cmpf oge, %2, %3 : vector<8x128xf32>
    %cst_4 = arith.constant 2.000000e-01 : f32
    %5 = vector.broadcast %cst_4 : f32 to vector<8x128xf32>
    %6 = arith.mulf %5, %2 : vector<8x128xf32>
    %7 = arith.select %4, %2, %6 : vector<8x128xi1>, vector<8x128xf32>
    %c128 = arith.constant 128 : index
    %c0_5 = arith.constant 0 : index
    %8 = vector.load %arg2[%c128, %c0_5] : memref<1024x128xf32, #tpu.memory_space<vmem>>, vector<128x128xf32>
    %cst_6 = arith.constant dense<0.000000e+00> : vector<8x128xf32>
    %9 = tpu.matmul %0, %8, %cst_6 {dimension_numbers = #tpu.dot_dimension_numbers<[1], [0], [0], [1], [0, 0, 1, 1], [], []>} : vector<8x128xf32>, vector<128x128xf32>, vector<8x128xf32> -> vector<8x128xf32>
    %c256 = arith.constant 256 : index
    %c0_7 = arith.constant 0 : index
    %10 = vector.load %arg2[%c256, %c0_7] : memref<1024x128xf32, #tpu.memory_space<vmem>>, vector<128x128xf32>
    %cst_8 = arith.constant dense<0.000000e+00> : vector<8x128xf32>
    %11 = tpu.matmul %7, %10, %cst_8 {dimension_numbers = #tpu.dot_dimension_numbers<[1], [0], [0], [1], [0, 0, 1, 1], [], []>} : vector<8x128xf32>, vector<128x128xf32>, vector<8x128xf32> -> vector<8x128xf32>
    %12 = arith.addf %9, %11 : vector<8x128xf32>
    %cst_9 = arith.constant 0.000000e+00 : f32
    %13 = vector.broadcast %cst_9 : f32 to vector<8x128xf32>
    %14 = arith.maximumf %12, %13 : vector<8x128xf32>
    %c384 = arith.constant 384 : index
    %c0_10 = arith.constant 0 : index
    %15 = vector.load %arg2[%c384, %c0_10] : memref<1024x128xf32, #tpu.memory_space<vmem>>, vector<128x128xf32>
    %cst_11 = arith.constant dense<0.000000e+00> : vector<8x128xf32>
    %16 = tpu.matmul %14, %15, %cst_11 {dimension_numbers = #tpu.dot_dimension_numbers<[1], [0], [0], [1], [0, 0, 1, 1], [], []>} : vector<8x128xf32>, vector<128x128xf32>, vector<8x128xf32> -> vector<8x128xf32>
    %c512 = arith.constant 512 : index
    %c0_12 = arith.constant 0 : index
    %17 = vector.load %arg2[%c512, %c0_12] : memref<1024x128xf32, #tpu.memory_space<vmem>>, vector<128x128xf32>
    %cst_13 = arith.constant dense<0.000000e+00> : vector<8x128xf32>
    %18 = tpu.matmul %0, %17, %cst_13 {dimension_numbers = #tpu.dot_dimension_numbers<[1], [0], [0], [1], [0, 0, 1, 1], [], []>} : vector<8x128xf32>, vector<128x128xf32>, vector<8x128xf32> -> vector<8x128xf32>
    %19 = arith.addf %16, %18 : vector<8x128xf32>
    %cst_14 = arith.constant 0.000000e+00 : f32
    %20 = vector.broadcast %cst_14 : f32 to vector<8x128xf32>
    %21 = arith.maximumf %19, %20 : vector<8x128xf32>
    %c640 = arith.constant 640 : index
    %c0_15 = arith.constant 0 : index
    %22 = vector.load %arg2[%c640, %c0_15] : memref<1024x128xf32, #tpu.memory_space<vmem>>, vector<128x128xf32>
    %cst_16 = arith.constant dense<0.000000e+00> : vector<8x128xf32>
    %23 = tpu.matmul %21, %22, %cst_16 {dimension_numbers = #tpu.dot_dimension_numbers<[1], [0], [0], [1], [0, 0, 1, 1], [], []>} : vector<8x128xf32>, vector<128x128xf32>, vector<8x128xf32> -> vector<8x128xf32>
    %cst_17 = arith.constant 0.000000e+00 : f32
    %24 = vector.broadcast %cst_17 : f32 to vector<8x128xf32>
    %25 = arith.maximumf %23, %24 : vector<8x128xf32>
    %c768 = arith.constant 768 : index
    %c0_18 = arith.constant 0 : index
    %26 = vector.load %arg2[%c768, %c0_18] : memref<1024x128xf32, #tpu.memory_space<vmem>>, vector<128x128xf32>
    %cst_19 = arith.constant dense<0.000000e+00> : vector<8x128xf32>
    %27 = tpu.matmul %25, %26, %cst_19 {dimension_numbers = #tpu.dot_dimension_numbers<[1], [0], [0], [1], [0, 0, 1, 1], [], []>} : vector<8x128xf32>, vector<128x128xf32>, vector<8x128xf32> -> vector<8x128xf32>
    %cst_20 = arith.constant 0.000000e+00 : f32
    %28 = vector.broadcast %cst_20 : f32 to vector<8x128xf32>
    %29 = arith.maximumf %27, %28 : vector<8x128xf32>
    %c896 = arith.constant 896 : index
    %c0_21 = arith.constant 0 : index
    %30 = vector.load %arg2[%c896, %c0_21] : memref<1024x128xf32, #tpu.memory_space<vmem>>, vector<128x128xf32>
    %cst_22 = arith.constant dense<0.000000e+00> : vector<8x128xf32>
    %31 = tpu.matmul %29, %30, %cst_22 {dimension_numbers = #tpu.dot_dimension_numbers<[1], [0], [0], [1], [0, 0, 1, 1], [], []>} : vector<8x128xf32>, vector<128x128xf32>, vector<8x128xf32> -> vector<8x128xf32>
    %c0_23 = arith.constant 0 : index
    %c0_24 = arith.constant 0 : index
    %32 = vector.load %arg3[%c0_23, %c0_24] : memref<8x128xf32, #tpu.memory_space<vmem>>, vector<8x128xf32>
    tpu.vector_store %arg3[%c0_23, %c0_24], %31 {strides = array<i32>} : memref<8x128xf32, #tpu.memory_space<vmem>>, vector<8x128xf32>,
    return
  }
  func.func @transform_0(%arg0: i32) -> (i32, i32) {
    %c0_i32 = arith.constant 0 : i32
    %c0_i32_0 = arith.constant 0 : i32
    return %arg0, %c0_i32 : i32, i32
  }
  func.func @transform_1(%arg0: i32) -> (i32, i32) {
    %c0_i32 = arith.constant 0 : i32
    %c0_i32_0 = arith.constant 0 : i32
    %c0_i32_1 = arith.constant 0 : i32
    return %c0_i32, %c0_i32_0 : i32, i32
  }
  func.func @transform_2(%arg0: i32) -> (i32, i32) {
    %c0_i32 = arith.constant 0 : i32
    %c0_i32_0 = arith.constant 0 : i32
    return %arg0, %c0_i32 : i32, i32
  }
}

</mosaic_0001>

<bundles_post_ra>
// kernel: a2c_forward.1
= control target key start
LH: loop header
LB: loop body
LE: loop exit
PB: predicated region body
PF: predicated region fallthrough
CT: control target
= control target key end

     0   :  { %7 = vsyncpa [#allocation3], 0  ;;  %s610_s9 = smov 0   ;;  %s647_s0 = inlined_call_operand.vmem [shape: f32[16,128], index: 0, kind: input, shape index: {}]   ;;  %s648_s1 = inlined_call_operand.hbm [shape: f32[1024,128], index: 1, kind: input, shape index: {}]   ;;  %s649_s2 = inlined_call_operand.vmem [shape: f32[16,128], index: 2, kind: output, shape index: {}]  }
   0x1 LB: > { %s102_s12 = sshll.u32 %s648_s1, 4  ;;  %s619_s13 = sadd.s32 4294967295, %s590_s9   ;;  %s590_s9 = sphi %s610_s9, %s13_s9   ;;  %s103_s12 = int_to_ptr.hbm [resolvable:$true] %s102_s12 }
   0x2   : > { %p520_p0 = scmp.ge.s32.totalorder %s590_s9, 1  ;;  %p91_p1 = scmp.lt.s32.totalorder %s590_s9, 3 }
   0x3   : > { %p537_p2 = scmp.eq.s32.totalorder %s619_s13, 0  ;;  %s592_s14 = smov [#allocation2]  }
   0x4   : > { %p92_p3 = pnand %p520_p0, %p91_p1  ;;  %s104_s15 = sshll.u32 %s592_s14, 4  ;;  %s105_s15 = int_to_ptr.vmem [resolvable:$true] %s104_s15 }
   0x5   : > { %s593_s16 = smov 128   ;;  %s594_s17 = smov 8  }
   0x6   : > { %p533_p4 = pneg %p92_p3  ;;  %127 = sbr.rel (%p92_p3) target bundleno = 828 (0x33c), region = 28 }
   0x8   : > { %p534_p5 = pnand %p537_p2, %p533_p4 }
   0xa   : > { %536 = dma.hbm_to_vmem [thread:$0]  (!%p534_p5), %s103_s12, 16384, %s105_s15, [#allocation3], %s593_s16, %s593_s16, %s594_s17  }
   0xb   : > { %585 = dma.done.wait (%p537_p2), [#allocation3], 16384  }
   0xc   : > { %587 = vsyncadd (%p537_p2), [#allocation3], 4294950912  ;;  %v172_v0 = vld [vmem:[#allocation2 + $0x78] sm:$0xff]  ;;  %v171_v1 = vld [vmem:[#allocation2 + $0x70] sm:$0xff]  ;;  %p148_p6 = scmp.lt.s32.totalorder %s619_s13, 1 }
   0xd   : > { %173 = vmatpush.msra.mxu0 %v172_v0  ;;  %v170_v2 = vld [vmem:[#allocation2 + $0x68] sm:$0xff]  ;;  %v169_v3 = vld [vmem:[#allocation2 + $0x60] sm:$0xff]  ;;  %v211_v4 = vld [vmem:[#allocation2 + $0xf8] sm:$0xff] }
   0xe   : > { %v168_v5 = vld [vmem:[#allocation2 + $0x58] sm:$0xff]  ;;  %248 = vmatpush.msra.mxu2 %v211_v4  ;;  %v210_v6 = vld [vmem:[#allocation2 + $0xf0] sm:$0xff]  ;;  %v209_v8 = vld [vmem:[#allocation2 + $0xe8] sm:$0xff]  ;;  %s651_s13 = smov (!%p148_p6, %s619_s13), 1 }
   0xf   : > { %174 = vmatpush.msra.mxu0 %v171_v1  ;;  %v227_v7 = vld [vmem:[#allocation2 + $0x178] sm:$0xff]  ;;  %v226_v9 = vld [vmem:[#allocation2 + $0x170] sm:$0xff]  ;;  %v225_v11 = vld [vmem:[#allocation2 + $0x168] sm:$0xff]  ;;  %s525_s18 = sshll.u32 %s651_s13, 3 }
  0x10   : > { %228 = vmatpush.msra.mxu1 %v227_v7  ;;  %v167_v10 = vld [vmem:[#allocation2 + $0x50] sm:$0xff]  ;;  %249 = vmatpush.msra.mxu2 %v210_v6  ;;  %v208_v12 = vld [vmem:[#allocation2 + $0xe0] sm:$0xff]  ;;  %v166_v13 = vld [vmem:[#allocation2 + $0x48] sm:$0xff]  ;;  %s151_s21 = scalar_lea.vmem %s647_s0, %s525_s18  ;;  %s155_s24 = scalar_lea.vmem %s649_s2, %s525_s18 }
  0x11   : > { %175 = vmatpush.msra.mxu0 %v170_v2  ;;  %v224_v14 = vld [vmem:[#allocation2 + $0x160] sm:$0xff]  ;;  %v207_v15 = vld [vmem:[#allocation2 + $0xd8] sm:$0xff]  ;;  %v206_v18 = vld [vmem:[#allocation2 + $0xd0] sm:$0xff] }
  0x12   : > { %229 = vmatpush.msra.mxu1 %v226_v9  ;;  %250 = vmatpush.msra.mxu2 %v209_v8  ;;  %v165_v16 = vld [vmem:[#allocation2 + $0x40] sm:$0xff]  ;;  %v223_v17 = vld [vmem:[#allocation2 + $0x158] sm:$0xff]  ;;  %v222_v20 = vld [vmem:[#allocation2 + $0x150] sm:$0xff] }
  0x13   : > { %176 = vmatpush.msra.mxu0 %v169_v3  ;;  %v164_v19 = vld [vmem:[#allocation2 + $0x38] sm:$0xff]  ;;  %v205_v21 = vld [vmem:[#allocation2 + $0xc8] sm:$0xff]  ;;  %v163_v22 = vld [vmem:[#allocation2 + $0x30] sm:$0xff] }
  0x14   : > { %230 = vmatpush.msra.mxu1 %v225_v11  ;;  %251 = vmatpush.msra.mxu2 %v208_v12  ;;  %v221_v23 = vld [vmem:[#allocation2 + $0x148] sm:$0xff]  ;;  %v204_v24 = vld [vmem:[#allocation2 + $0xc0] sm:$0xff]  ;;  %v203_v27 = vld [vmem:[#allocation2 + $0xb8] sm:$0xff] }
  0x15   : > { %177 = vmatpush.msra.mxu0 %v168_v5  ;;  %v162_v25 = vld [vmem:[#allocation2 + $0x28] sm:$0xff]  ;;  %v220_v26 = vld [vmem:[#allocation2 + $0x140] sm:$0xff]  ;;  %v219_v29 = vld [vmem:[#allocation2 + $0x138] sm:$0xff] }
  0x16   : > { %231 = vmatpush.msra.mxu1 %v224_v14  ;;  %252 = vmatpush.msra.mxu2 %v207_v15  ;;  %v161_v28 = vld [vmem:[#allocation2 + $0x20] sm:$0xff]  ;;  %v202_v30 = vld [vmem:[#allocation2 + $0xb0] sm:$0xff]  ;;  %v160_v31 = vld [vmem:[#allocation2 + $0x18] sm:$0xff] }
  0x17   : > { %178 = vmatpush.msra.mxu0 %v167_v10  ;;  %v218_v32 = vld [vmem:[#allocation2 + $0x130] sm:$0xff]  ;;  %v201_v33 = vld [vmem:[#allocation2 + $0xa8] sm:$0xff]  ;;  %v200_v36 = vld [vmem:[#allocation2 + $0xa0] sm:$0xff] }
  0x18   : > { %232 = vmatpush.msra.mxu1 %v223_v17  ;;  %253 = vmatpush.msra.mxu2 %v206_v18  ;;  %v159_v34 = vld [vmem:[#allocation2 + $0x10] sm:$0xff]  ;;  %v217_v35 = vld [vmem:[#allocation2 + $0x128] sm:$0xff]  ;;  %v216_v38 = vld [vmem:[#allocation2 + $0x120] sm:$0xff] }
  0x19   : > { %179 = vmatpush.msra.mxu0 %v166_v13  ;;  %v158_v37 = vld [vmem:[#allocation2 + $0x8] sm:$0xff]  ;;  %v199_v39 = vld [vmem:[#allocation2 + $0x98] sm:$0xff]  ;;  %v157_v40 = vld [vmem:[#allocation2] sm:$0xff] }
  0x1a   : > { %233 = vmatpush.msra.mxu1 %v222_v20  ;;  %254 = vmatpush.msra.mxu2 %v205_v21  ;;  %v215_v41 = vld [vmem:[#allocation2 + $0x118] sm:$0xff]  ;;  %v634_v42 = vld [vmem:[%s151_s21] sm:$0xff]  ;;  %v198_v43 = vld [vmem:[#allocation2 + $0x90] sm:$0xff] }
  0x1b   : > { %180 = vmatpush.msra.mxu0 %v165_v16  ;;  %v214_v44 = vld [vmem:[#allocation2 + $0x110] sm:$0xff]  ;;  %v197_v45 = vld [vmem:[#allocation2 + $0x88] sm:$0xff]  ;;  %v196_v46 = vld [vmem:[#allocation2 + $0x80] sm:$0xff] }
  0x1c   : > { %234 = vmatpush.msra.mxu1 %v221_v23  ;;  %255 = vmatpush.msra.mxu2 %v204_v24  ;;  %v213_v47 = vld [vmem:[#allocation2 + $0x108] sm:$0xff]  ;;  %v212_v48 = vld [vmem:[#allocation2 + $0x100] sm:$0xff]  ;;  %v300_v49 = vld [vmem:[#allocation2 + $0x278] sm:$0xff] }
  0x1d   : > { %181 = vmatpush.msra.mxu0 %v164_v19  ;;  %v299_v50 = vld [vmem:[#allocation2 + $0x270] sm:$0xff]  ;;  %301 = vmatpush.msra.mxu3 %v300_v49  ;;  %v284_v51 = vld [vmem:[#allocation2 + $0x1f8] sm:$0xff]  ;;  %v298_v52 = vld [vmem:[#allocation2 + $0x268] sm:$0xff] }
  0x1e   : > { %235 = vmatpush.msra.mxu1 %v220_v26  ;;  %256 = vmatpush.msra.mxu2 %v203_v27  ;;  %v283_v53 = vld [vmem:[#allocation2 + $0x1f0] sm:$0xff]  ;;  %v282_v54 = vld [vmem:[#allocation2 + $0x1e8] sm:$0xff]  ;;  %v297_v55 = vld [vmem:[#allocation2 + $0x260] sm:$0xff] }
  0x1f   : > { %182 = vmatpush.msra.mxu0 %v163_v22  ;;  %302 = vmatpush.msra.mxu3 %v299_v50  ;;  %v281_v56 = vld [vmem:[#allocation2 + $0x1e0] sm:$0xff]  ;;  %v296_v57 = vld [vmem:[#allocation2 + $0x258] sm:$0xff]  ;;  %v295_v59 = vld [vmem:[#allocation2 + $0x250] sm:$0xff] }
  0x20   : > { %236 = vmatpush.msra.mxu1 %v219_v29  ;;  %257 = vmatpush.msra.mxu2 %v202_v30  ;;  %v280_v58 = vld [vmem:[#allocation2 + $0x1d8] sm:$0xff]  ;;  %v279_v60 = vld [vmem:[#allocation2 + $0x1d0] sm:$0xff]  ;;  %v294_v61 = vld [vmem:[#allocation2 + $0x248] sm:$0xff] }
  0x21   : > { %183 = vmatpush.msra.mxu0 %v162_v25  ;;  %303 = vmatpush.msra.mxu3 %v298_v52  ;;  %v278_v62 = vld [vmem:[#allocation2 + $0x1c8] sm:$0xff]  ;;  %v293_v63 = vld [vmem:[#allocation2 + $0x240] sm:$0xff]  ;;  %v292_v1 = vld [vmem:[#allocation2 + $0x238] sm:$0xff] }
  0x22   : > { %237 = vmatpush.msra.mxu1 %v218_v32  ;;  %258 = vmatpush.msra.mxu2 %v201_v33  ;;  %v277_v0 = vld [vmem:[#allocation2 + $0x1c0] sm:$0xff]  ;;  %v276_v2 = vld [vmem:[#allocation2 + $0x1b8] sm:$0xff]  ;;  %v291_v3 = vld [vmem:[#allocation2 + $0x230] sm:$0xff] }
  0x23   : > { %184 = vmatpush.msra.mxu0 %v161_v28  ;;  %304 = vmatpush.msra.mxu3 %v297_v55  ;;  %v275_v4 = vld [vmem:[#allocation2 + $0x1b0] sm:$0xff]  ;;  %v290_v5 = vld [vmem:[#allocation2 + $0x228] sm:$0xff]  ;;  %v289_v7 = vld [vmem:[#allocation2 + $0x220] sm:$0xff] }
  0x24   : > { %238 = vmatpush.msra.mxu1 %v217_v35  ;;  %259 = vmatpush.msra.mxu2 %v200_v36  ;;  %v274_v6 = vld [vmem:[#allocation2 + $0x1a8] sm:$0xff]  ;;  %v273_v8 = vld [vmem:[#allocation2 + $0x1a0] sm:$0xff]  ;;  %v288_v9 = vld [vmem:[#allocation2 + $0x218] sm:$0xff] }
  0x25   : > { %185 = vmatpush.msra.mxu0 %v160_v31  ;;  %305 = vmatpush.msra.mxu3 %v296_v57  ;;  %v272_v10 = vld [vmem:[#allocation2 + $0x198] sm:$0xff]  ;;  %v287_v11 = vld [vmem:[#allocation2 + $0x210] sm:$0xff]  ;;  %v286_v12 = vld [vmem:[#allocation2 + $0x208] sm:$0xff] }
  0x26   : > { %239 = vmatpush.msra.mxu1 %v216_v38  ;;  %260 = vmatpush.msra.mxu2 %v199_v39  ;;  %v285_v14 = vld [vmem:[#allocation2 + $0x200] sm:$0xff]  ;;  %v271_v17 = vld [vmem:[#allocation2 + $0x190] sm:$0xff]  ;;  %v270_v18 = vld [vmem:[#allocation2 + $0x188] sm:$0xff] }
  0x27   : > { %186 = vmatpush.msra.mxu0 %v159_v34  ;;  %306 = vmatpush.msra.mxu3 %v295_v59  ;;  %v269_v19 = vld [vmem:[#allocation2 + $0x180] sm:$0xff]  ;;  %v357_v20 = vld [vmem:[#allocation2 + $0x2f8] sm:$0xff]  ;;  %v356_v21 = vld [vmem:[#allocation2 + $0x2f0] sm:$0xff] }
  0x28   : > { %240 = vmatpush.msra.mxu1 %v215_v41  ;;  %261 = vmatpush.msra.mxu2 %v198_v43  ;;  %v355_v22 = vld [vmem:[#allocation2 + $0x2e8] sm:$0xff]  ;;  %v354_v23 = vld [vmem:[#allocation2 + $0x2e0] sm:$0xff]  ;;  %v353_v24 = vld [vmem:[#allocation2 + $0x2d8] sm:$0xff] }
  0x29   : > { %187 = vmatpush.msra.mxu0 %v158_v37  ;;  %307 = vmatpush.msra.mxu3 %v294_v61  ;;  %v352_v25 = vld [vmem:[#allocation2 + $0x2d0] sm:$0xff]  ;;  %v351_v26 = vld [vmem:[#allocation2 + $0x2c8] sm:$0xff]  ;;  %v350_v27 = vld [vmem:[#allocation2 + $0x2c0] sm:$0xff] }
  0x2a   : > { %241 = vmatpush.msra.mxu1 %v214_v44  ;;  %262 = vmatpush.msra.mxu2 %v197_v45  ;;  %v349_v28 = vld [vmem:[#allocation2 + $0x2b8] sm:$0xff]  ;;  %v348_v29 = vld [vmem:[#allocation2 + $0x2b0] sm:$0xff]  ;;  %v347_v30 = vld [vmem:[#allocation2 + $0x2a8] sm:$0xff] }
  0x2b   : > { %188 = vmatpush.msra.mxu0 %v157_v40  ;;  %308 = vmatpush.msra.mxu3 %v293_v63  ;;  %v346_v31 = vld [vmem:[#allocation2 + $0x2a0] sm:$0xff]  ;;  %v345_v32 = vld [vmem:[#allocation2 + $0x298] sm:$0xff]  ;;  %v344_v37 = vld [vmem:[#allocation2 + $0x290] sm:$0xff] }
  0x2c   : > { %189 = vmatmul.f32.vlgmr.msra.gmra.mxu0 %v634_v42  ;;  %263 = vmatpush.msra.mxu2 %v196_v46  ;;  %v343_v38 = vld [vmem:[#allocation2 + $0x288] sm:$0xff]  ;;  %v342_v39 = vld [vmem:[#allocation2 + $0x280] sm:$0xff]  ;;  %v394_v40 = vld [vmem:[#allocation2 + $0x378] sm:$0xff] }
  0x2d   : > { %264 = vmatmul.f32.vlgmr.msra.gmra.mxu2 %v634_v42  ;;  %242 = vmatpush.msra.mxu1 %v213_v47  ;;  %v393_v41 = vld [vmem:[#allocation2 + $0x370] sm:$0xff]  ;;  %v391_v43 = vld [vmem:[#allocation2 + $0x360] sm:$0xff]  ;;  %v390_v44 = vld [vmem:[#allocation2 + $0x358] sm:$0xff] }
  0x2e   : > { %321 = vmatpush.msrb.mxu0 %v284_v51  ;;  %309 = vmatpush.msra.mxu3 %v292_v1  ;;  %v389_v45 = vld [vmem:[#allocation2 + $0x350] sm:$0xff]  ;;  %v388_v46 = vld [vmem:[#allocation2 + $0x348] sm:$0xff]  ;;  %v387_v47 = vld [vmem:[#allocation2 + $0x340] sm:$0xff] }
  0x2f   : > { %243 = vmatpush.msra.mxu1 %v212_v48  ;;  %395 = vmatpush.msrb.mxu2 %v394_v40  ;;  %v386_v48 = vld [vmem:[#allocation2 + $0x338] sm:$0xff]  ;;  %v385_v49 = vld [vmem:[#allocation2 + $0x330] sm:$0xff]  ;;  %v384_v50 = vld [vmem:[#allocation2 + $0x328] sm:$0xff] }
  0x30   : > { %322 = vmatpush.msrb.mxu0 %v283_v53  ;;  %310 = vmatpush.msra.mxu3 %v291_v3  ;;  %v383_v51 = vld [vmem:[#allocation2 + $0x320] sm:$0xff]  ;;  %v382_v52 = vld [vmem:[#allocation2 + $0x318] sm:$0xff]  ;;  %v381_v53 = vld [vmem:[#allocation2 + $0x310] sm:$0xff] }
  0x31   : > { %358 = vmatpush.msrb.mxu1 %v357_v20  ;;  %396 = vmatpush.msrb.mxu2 %v393_v41  ;;  %v379_v59 = vld [vmem:[#allocation2 + $0x300] sm:$0xff]  ;;  %v430_v61 = vld [vmem:[#allocation2 + $0x3f0] sm:$0xff] }
  0x32   : > { %323 = vmatpush.msrb.mxu0 %v282_v54  ;;  %311 = vmatpush.msra.mxu3 %v290_v5  ;;  %v428_v63 = vld [vmem:[#allocation2 + $0x3e0] sm:$0xff]  ;;  %v426_v1 = vld [vmem:[#allocation2 + $0x3d0] sm:$0xff] }
  0x33   : > { %359 = vmatpush.msrb.mxu1 %v356_v21  ;;  %v424_v3 = vld [vmem:[#allocation2 + $0x3c0] sm:$0xff]  ;;  %v422_v5 = vld [vmem:[#allocation2 + $0x3b0] sm:$0xff] }
  0x34   : > { %324 = vmatpush.msrb.mxu0 %v281_v56  ;;  %312 = vmatpush.msra.mxu3 %v289_v7  ;;  %v420_v7 = vld [vmem:[#allocation2 + $0x3a0] sm:$0xff] }
  0x35   : > { %360 = vmatpush.msrb.mxu1 %v355_v22 }
  0x36   : > { %325 = vmatpush.msrb.mxu0 %v280_v58  ;;  %313 = vmatpush.msra.mxu3 %v288_v9  ;;  %v380_v58 = vld [vmem:[#allocation2 + $0x308] sm:$0xff]  ;;  %v418_v9 = vld [vmem:[#allocation2 + $0x390] sm:$0xff] }
  0x37   : > { %361 = vmatpush.msrb.mxu1 %v354_v23 }
  0x38   : > { %326 = vmatpush.msrb.mxu0 %v279_v60  ;;  %314 = vmatpush.msra.mxu3 %v287_v11  ;;  %v431_v60 = vld [vmem:[#allocation2 + $0x3f8] sm:$0xff] }
  0x39   : > { %362 = vmatpush.msrb.mxu1 %v353_v24 }
  0x3a   : > { %327 = vmatpush.msrb.mxu0 %v278_v62  ;;  %315 = vmatpush.msra.mxu3 %v286_v12  ;;  %v429_v62 = vld [vmem:[#allocation2 + $0x3e8] sm:$0xff] }
  0x3b   : > { %363 = vmatpush.msrb.mxu1 %v352_v25  ;;  %v417_v12 = vld [vmem:[#allocation2 + $0x388] sm:$0xff] }
  0x3c   : > { %328 = vmatpush.msrb.mxu0 %v277_v0  ;;  %316 = vmatpush.msra.mxu3 %v285_v14  ;;  %v427_v0 = vld [vmem:[#allocation2 + $0x3d8] sm:$0xff] }
  0x3d   : > { %317 = vmatmul.f32.vlgmr.msra.gmra.mxu3 %v634_v42  ;;  %364 = vmatpush.msrb.mxu1 %v351_v26  ;;  %v392_v42 = vld [vmem:[#allocation2 + $0x368] sm:$0xff] }
  0x3e   : > { %329 = vmatpush.msrb.mxu0 %v276_v2  ;;  %397 = vmatpush.msrb.mxu2 %v392_v42  ;;  %v425_v2 = vld [vmem:[#allocation2 + $0x3c8] sm:$0xff] }
  0x3f   : > { %365 = vmatpush.msrb.mxu1 %v350_v27  ;;  %432 = vmatpush.msrb.mxu3 %v431_v60 }
  0x40   : > { %330 = vmatpush.msrb.mxu0 %v275_v4  ;;  %398 = vmatpush.msrb.mxu2 %v391_v43  ;;  %v423_v4 = vld [vmem:[#allocation2 + $0x3b8] sm:$0xff] }
  0x41   : > { %366 = vmatpush.msrb.mxu1 %v349_v28  ;;  %433 = vmatpush.msrb.mxu3 %v430_v61 }
  0x42   : > { %331 = vmatpush.msrb.mxu0 %v274_v6  ;;  %399 = vmatpush.msrb.mxu2 %v390_v44  ;;  %v421_v6 = vld [vmem:[#allocation2 + $0x3a8] sm:$0xff] }
  0x43   : > { %367 = vmatpush.msrb.mxu1 %v348_v29  ;;  %434 = vmatpush.msrb.mxu3 %v429_v62 }
  0x44   : > { %332 = vmatpush.msrb.mxu0 %v273_v8  ;;  %400 = vmatpush.msrb.mxu2 %v389_v45  ;;  %v419_v8 = vld [vmem:[#allocation2 + $0x398] sm:$0xff] }
  0x45   : > { %368 = vmatpush.msrb.mxu1 %v347_v30  ;;  %435 = vmatpush.msrb.mxu3 %v428_v63 }
  0x46   : > { %333 = vmatpush.msrb.mxu0 %v272_v10  ;;  %401 = vmatpush.msrb.mxu2 %v388_v46 }
  0x47   : > { %369 = vmatpush.msrb.mxu1 %v346_v31  ;;  %436 = vmatpush.msrb.mxu3 %v427_v0 }
  0x48   : > { %334 = vmatpush.msrb.mxu0 %v271_v17  ;;  %402 = vmatpush.msrb.mxu2 %v387_v47 }
  0x49   : > { %370 = vmatpush.msrb.mxu1 %v345_v32  ;;  %437 = vmatpush.msrb.mxu3 %v426_v1 }
  0x4a   : > { %335 = vmatpush.msrb.mxu0 %v270_v18  ;;  %403 = vmatpush.msrb.mxu2 %v386_v48 }
  0x4b   : > { %371 = vmatpush.msrb.mxu1 %v344_v37  ;;  %438 = vmatpush.msrb.mxu3 %v425_v2 }
  0x4c   : > { %336 = vmatpush.msrb.mxu0 %v269_v19  ;;  %404 = vmatpush.msrb.mxu2 %v385_v49 }
  0x4d   : > { %372 = vmatpush.msrb.mxu1 %v343_v38  ;;  %439 = vmatpush.msrb.mxu3 %v424_v3 }
  0x4e   : > { %405 = vmatpush.msrb.mxu2 %v384_v50 }
  0x4f   : > { %373 = vmatpush.msrb.mxu1 %v342_v39  ;;  %440 = vmatpush.msrb.mxu3 %v423_v4 }
  0x50   : > { %406 = vmatpush.msrb.mxu2 %v383_v51 }
  0x51   : > { %441 = vmatpush.msrb.mxu3 %v422_v5 }
  0x52   : > { %407 = vmatpush.msrb.mxu2 %v382_v52 }
  0x53   : > { %442 = vmatpush.msrb.mxu3 %v421_v6 }
  0x54   : > { %408 = vmatpush.msrb.mxu2 %v381_v53 }
  0x55   : > { %443 = vmatpush.msrb.mxu3 %v420_v7 }
  0x56   : > { %409 = vmatpush.msrb.mxu2 %v380_v58 }
  0x57   : > { %444 = vmatpush.msrb.mxu3 %v419_v8 }
  0x58   : > { %410 = vmatpush.msrb.mxu2 %v379_v59 }
  0x59   : > { %445 = vmatpush.msrb.mxu3 %v418_v9 }
  0x5b   : > { %446 = vmatpush.msrb.mxu3 %v417_v12 }
  0xa9   : > { %v190_v13 = vpop.f32.mrf.mxu0 }
  0xaa   : > { %v194_v15 = vmul.f32 0.2, %v190_v13  ;;  %vm193_vm0 = vcmp.ge.f32.partialorder %v190_v13, 0.0 }
  0xac   : > { %v195_v16 = vsel %vm193_vm0, %v190_v13, %v194_v15  ;;  %v416_v13 = vld [vmem:[#allocation2 + $0x380] sm:$0xff] }
  0xad   : > { %244 = vmatmul.f32.vlgmr.msra.gmra.mxu1 %v195_v16  ;;  %447 = vmatpush.msrb.mxu3 %v416_v13 }
  0xb0   : > { %v265_v33 = vpop.f32.mrf.mxu2 }
  0xc0   : > { %v318_v54 = vpop.f32.mrf.mxu3 }
 0x12a   : > { %v245_v34 = vpop.f32.mrf.mxu1 }
 0x12b   : > { %v266_v35 = vadd.f32 %v265_v33, %v245_v34 }
 0x12d   : > { %v268_v36 = vmax.f32 %v266_v35, 0.0 }
 0x12f   : > { %337 = vmatmul.f32.vlgmr.msrb.gmra.mxu0 %v268_v36 }
 0x1ac   : > { %v338_v55 = vpop.f32.mrf.mxu0 }
 0x1ad   : > { %v339_v56 = vadd.f32 %v338_v55, %v318_v54 }
 0x1af   : > { %v341_v57 = vmax.f32 %v339_v56, 0.0 }
 0x1b1   : > { %374 = vmatmul.f32.vlgmr.msrb.gmra.mxu1 %v341_v57 }
 0x22e   : > { %v375_v10 = vpop.f32.mrf.mxu1 }
 0x22f   : > { %v378_v11 = vmax.f32 %v375_v10, 0.0 }
 0x231   : > { %411 = vmatmul.f32.vlgmr.msrb.gmra.mxu2 %v378_v11 }
 0x2b4   : > { %v412_v14 = vpop.f32.mrf.mxu2 }
 0x2b5   : > { %v415_v15 = vmax.f32 %v412_v14, 0.0 }
 0x2b7   : > { %448 = vmatmul.f32.vlgmr.msrb.gmra.mxu3 %v415_v15 }
 0x33a   : > { %v449_v16 = vpop.f32.mrf.mxu3 }
 0x33b   : > { %452 = vst [vmem:[%s155_s24] sm:$0xff] %v449_v16 }
 0x33c PF: > { %s13_s9 = sadd.s32 1, %s590_s9  }
 0x33d   : > { %p10_p7 = scmp.ge.s32.totalorder %s13_s9, 4  }
 0x33f   :  { %12 = sbr.rel (!%p10_p7) target bundleno = 1 (0x1), region = 63 }
 0x344   :  { %472 = vsyncpa [#allocation3], 1 }
 0x345   :  { %474 = vsyncpa [#allocation3 + $0x1], 1 }

</bundles_post_ra>
